<compile_context>
chip_gen: v7x
topology: tpu7x:2x2x1
jax: 0.10.0
libtpu: 0.0.40
codegen_flags: <defaults>
</compile_context>

<pallas_src>
import functools

import jax
import jax.numpy as jnp
from jax.experimental import pallas as pl
from jax.experimental.pallas import tpu as pltpu


def _round_up(x, m):
    return (x + m - 1) // m * m


def enc_projection_kernel(enc_ref, ua_ref, bias_ref, out_ref):
    # proj_enc = encoder_outputs @ U_a + (b_W + b_U); grid-invariant, run once.
    out_ref[...] = (
        jnp.dot(enc_ref[...], ua_ref[...], preferred_element_type=jnp.float32)
        + bias_ref[...]
    )


def attention_kernel(q_ref, wa_ref, penc_ref, va_ref, enc_ref,
                     ctx_ref, w_ref, *, approx_recip):
    # One tile of TB queries per grid step; W_a / proj_enc / V_a / enc blocks
    # have constant index maps so they stay resident in VMEM across the grid.
    proj_q = jnp.dot(q_ref[...], wa_ref[...],
                     preferred_element_type=jnp.float32)          # (TB, H) f32

    # intermediate[b, s, :] = W_a(q_b) + (U_a(enc_s) + b_W + b_U)
    inter = proj_q[:, None, :] + penc_ref[...][None, :, :]        # (TB, S, H)
    t = jnp.tanh(inter)                                           # f32 (v5e: no bf16 EUP)

    # Lane-dense scores for the whole tile in one fused multiply + lane-reduce:
    # e[b, s] = sum_h V_a[h] * tanh(inter[b, s, h]).
    # (V_a's bias is omitted: softmax is shift-invariant, so it is dead.)
    e = jnp.sum(t * va_ref[...], axis=-1)                         # (TB, S) f32

    # softmax over the sequence axis (lanes), f32 throughout.
    e_max = jnp.max(e, axis=-1, keepdims=True)
    p = jnp.exp(e - e_max)
    denom = jnp.sum(p, axis=-1, keepdims=True)
    w = p * pl.reciprocal(denom, approx=approx_recip)             # (TB, S)

    w_ref[...] = w.astype(w_ref.dtype)
    # context = weights @ encoder_outputs -> one MXU push per tile, (TB, 2H)
    ctx_ref[...] = jnp.dot(w.astype(enc_ref.dtype), enc_ref[...],
                           preferred_element_type=jnp.float32
                           ).astype(ctx_ref.dtype)


def attention_forward(inp, enc, wa, ba, ua, bu, va, *,
                      compute_dtype=jnp.float32):
    """Bahdanau attention.

    inp: (H,) single decoder state (PyTorch forward semantics) or (B, H) batch.
    enc: (S, 2H) encoder outputs (shared across the batch).
    Weights are stored (in_features, out_features): y = x @ W + b.
    compute_dtype: dtype for MXU operands (use jnp.bfloat16 on v6e/v7x);
      accumulation and all elementwise / softmax math stays float32.
    """
    single = (inp.ndim == 1)
    inp2 = inp[None, :] if single else inp
    B, H = inp2.shape
    S, H2 = enc.shape
    f32 = jnp.float32

    # Query tiling: fill the MXU M dimension, amortize per-step overhead.
    B_pad = _round_up(B, 8)
    TB = min(B_pad, 256)
    B_pad = _round_up(B_pad, TB)
    grid_b = B_pad // TB

    q = inp2.astype(compute_dtype)
    if B_pad != B:
        q = jnp.pad(q, ((0, B_pad - B), (0, 0)))
    wa_c = wa.astype(compute_dtype)
    ua_c = ua.astype(compute_dtype)
    enc_c = enc.astype(compute_dtype)
    bias = (ba + bu).reshape(1, H).astype(f32)     # fold the two Linear biases
    va_row = va.reshape(1, H).astype(f32)          # V_a as a broadcastable row

    # Hoisted, grid-invariant encoder projection: computed once, not per tile.
    proj_enc = pl.pallas_call(
        enc_projection_kernel,
        out_shape=jax.ShapeDtypeStruct((S, H), f32),
        grid=(1,),
        in_specs=[pl.BlockSpec((S, H2), lambda i: (0, 0)),
                  pl.BlockSpec((H2, H), lambda i: (0, 0)),
                  pl.BlockSpec((1, H), lambda i: (0, 0))],
        out_specs=pl.BlockSpec((S, H), lambda i: (0, 0)),
    )(enc_c, ua_c, bias)

    kernel = functools.partial(attention_kernel,
                               approx_recip=(compute_dtype != f32))

    # TODO(synk): for real encoder lengths, tile S with an online softmax
    # (flash-style), single-buffer the constant-index resident blocks, and set
    # vmem_limit_bytes for v7x's 64 MiB VMEM instead of full-S resident blocks.
    ctx_p, w_p = pl.pallas_call(
        kernel,
        out_shape=(jax.ShapeDtypeStruct((B_pad, H2), f32),
                   jax.ShapeDtypeStruct((B_pad, S), f32)),
        grid=(grid_b,),
        in_specs=[
            pl.BlockSpec((TB, H), lambda i: (i, 0)),    # query tile per step
            pl.BlockSpec((H, H), lambda i: (0, 0)),     # W_a: resident
            pl.BlockSpec((S, H), lambda i: (0, 0)),     # hoisted enc projection
            pl.BlockSpec((1, H), lambda i: (0, 0)),     # V_a row: resident
            pl.BlockSpec((S, H2), lambda i: (0, 0)),    # enc: resident (context)
        ],
        out_specs=(
            pl.BlockSpec((TB, H2), lambda i: (i, 0)),   # context tile
            pl.BlockSpec((TB, S), lambda i: (i, 0)),    # full weights tile/step
        ),
        compiler_params=pltpu.CompilerParams(
            dimension_semantics=("parallel",)),         # v7x: shard tiles on 2 TCs
    )(q, wa_c, proj_enc, va_row, enc_c)

    ctx = ctx_p[:B]
    w = w_p[:B]
    if single:
        # PyTorch semantics with a 1-D `input`: context (2H,), weights (S, 1).
        return ctx[0], w[0].reshape(S, 1)
    return ctx, w


def reference_forward(inp, enc, wa, ba, ua, bu, va, bv):
    # Pure-JAX reference (keeps the mathematically-dead V_a bias to prove the
    # kernel's shift-invariance simplification is exact in effect).
    inter = (inp @ wa + ba) + (enc @ ua + bu)
    e = jnp.tanh(inter) @ va + bv
    w = jax.nn.softmax(e, axis=0)
    return jnp.sum(w * enc, axis=0), w


if __name__ == "__main__":
    H = 32   # hidden_size
    S = 8    # encoder sequence length
    B = 4    # batch of decoder states

    key = jax.random.PRNGKey(0)
    ks = jax.random.split(key, 9)

    # Deterministic parameter init (shapes from nn.Linear in __init__).
    wa = jax.random.normal(ks[0], (H, H), jnp.float32) * 0.1        # W_a: H -> H
    ba = jax.random.normal(ks[1], (H,), jnp.float32) * 0.1
    ua = jax.random.normal(ks[2], (2 * H, H), jnp.float32) * 0.1    # U_a: 2H -> H
    bu = jax.random.normal(ks[3], (H,), jnp.float32) * 0.1
    va = jax.random.normal(ks[4], (H, 1), jnp.float32) * 0.1        # V_a: H -> 1
    bv = jax.random.normal(ks[5], (1,), jnp.float32) * 0.1          # dead (softmax shift)

    inp = jax.random.normal(ks[6], (H,), jnp.float32)               # single decoder state
    enc = jax.random.normal(ks[7], (S, 2 * H), jnp.float32)         # encoder outputs
    inp_batch = jax.random.normal(ks[8], (B, H), jnp.float32)       # batch of states

    # Single-query path (exact PyTorch forward semantics / output shapes).
    ctx, w = attention_forward(inp, enc, wa, ba, ua, bu, va)
    # Batched path (f32): one query-tile grid, resident weights, lane-dense outs.
    ctx_b, w_b = attention_forward(inp_batch, enc, wa, ba, ua, bu, va)
    # Batched path with bf16 MXU operands (v6e/v7x fast path), f32 accumulation.
    ctx_h, w_h = attention_forward(inp_batch, enc, wa, ba, ua, bu, va,
                                   compute_dtype=jnp.bfloat16)
    jax.block_until_ready((ctx, w, ctx_b, w_b, ctx_h, w_h))

    ctx_r, w_r = reference_forward(inp, enc, wa, ba, ua, bu, va, bv)
    assert ctx.shape == (2 * H,) and w.shape == (S, 1)
    assert jnp.allclose(ctx, ctx_r, atol=1e-5), "context mismatch"
    assert jnp.allclose(w, w_r, atol=1e-5), "weights mismatch"

    ctx_rb, w_rb = jax.vmap(
        lambda q: reference_forward(q, enc, wa, ba, ua, bu, va, bv))(inp_batch)
    assert ctx_b.shape == (B, 2 * H) and w_b.shape == (B, S)
    assert jnp.allclose(ctx_b, ctx_rb, atol=1e-5), "batched context mismatch"
    assert jnp.allclose(w_b, w_rb[..., 0], atol=1e-5), "batched weights mismatch"

    # bf16 fast path: MXU inputs are quantized to bf16 -> looser tolerance.
    assert jnp.allclose(ctx_h, ctx_rb, atol=5e-2), "bf16 context mismatch"
    assert jnp.allclose(w_h, w_rb[..., 0], atol=5e-2), "bf16 weights mismatch"

    print("KERNEL_OK")
</pallas_src>

<mosaic_0001>
module attributes {stable_mosaic.version = 11 : i64} {
  func.func @enc_projection_kernel(%arg0: i32, %arg1: memref<8x64xf32, #tpu.memory_space<vmem>>, %arg2: memref<64x32xf32, #tpu.memory_space<vmem>>, %arg3: memref<1x32xf32, #tpu.memory_space<vmem>>, %arg4: memref<8x32xf32, #tpu.memory_space<vmem>>) attributes {dimension_semantics = [#tpu.dimension_semantics<arbitrary>], iteration_bounds = array<i64: 1>, scalar_prefetch = 0 : i64, scratch_operands = 0 : i64, tpu.core_type = #tpu.core_type<tc>, window_params = [{pipeline_mode = #tpu.pipeline_mode<synchronous>, transform_indices = @transform_0, window_bounds = array<i64: 8, 64>}, {pipeline_mode = #tpu.pipeline_mode<synchronous>, transform_indices = @transform_1, window_bounds = array<i64: 64, 32>}, {pipeline_mode = #tpu.pipeline_mode<synchronous>, transform_indices = @transform_2, window_bounds = array<i64: 1, 32>}, {pipeline_mode = #tpu.pipeline_mode<synchronous>, transform_indices = @transform_3, window_bounds = array<i64: 8, 32>}]} {
    %c0 = arith.constant 0 : index
    %c0_0 = arith.constant 0 : index
    %0 = vector.load %arg1[%c0, %c0_0] : memref<8x64xf32, #tpu.memory_space<vmem>>, vector<8x64xf32>
    %c0_1 = arith.constant 0 : index
    %c0_2 = arith.constant 0 : index
    %1 = vector.load %arg2[%c0_1, %c0_2] : memref<64x32xf32, #tpu.memory_space<vmem>>, vector<64x32xf32>
    %cst = arith.constant dense<0.000000e+00> : vector<8x32xf32>
    %2 = tpu.matmul %0, %1, %cst {dimension_numbers = #tpu.dot_dimension_numbers<[1], [0], [0], [1], [0, 0, 1, 1], [], []>} : vector<8x64xf32>, vector<64x32xf32>, vector<8x32xf32> -> vector<8x32xf32>
    %c0_3 = arith.constant 0 : index
    %c0_4 = arith.constant 0 : index
    %3 = vector.load %arg3[%c0_3, %c0_4] : memref<1x32xf32, #tpu.memory_space<vmem>>, vector<1x32xf32>
    %4 = vector.broadcast %3 : vector<1x32xf32> to vector<8x32xf32>
    %5 = arith.addf %2, %4 : vector<8x32xf32>
    %c0_5 = arith.constant 0 : index
    %c0_6 = arith.constant 0 : index
    %6 = vector.load %arg4[%c0_5, %c0_6] : memref<8x32xf32, #tpu.memory_space<vmem>>, vector<8x32xf32>
    tpu.vector_store %arg4[%c0_5, %c0_6], %5 {strides = array<i32>} : memref<8x32xf32, #tpu.memory_space<vmem>>, vector<8x32xf32>,
    return
  }
  func.func @transform_0(%arg0: i32) -> (i32, i32) {
    %c0_i32 = arith.constant 0 : i32
    %c0_i32_0 = arith.constant 0 : i32
    %c0_i32_1 = arith.constant 0 : i32
    return %c0_i32, %c0_i32_0 : i32, i32
  }
  func.func @transform_1(%arg0: i32) -> (i32, i32) {
    %c0_i32 = arith.constant 0 : i32
    %c0_i32_0 = arith.constant 0 : i32
    %c0_i32_1 = arith.constant 0 : i32
    return %c0_i32, %c0_i32_0 : i32, i32
  }
  func.func @transform_2(%arg0: i32) -> (i32, i32) {
    %c0_i32 = arith.constant 0 : i32
    %c0_i32_0 = arith.constant 0 : i32
    %c0_i32_1 = arith.constant 0 : i32
    return %c0_i32, %c0_i32_0 : i32, i32
  }
  func.func @transform_3(%arg0: i32) -> (i32, i32) {
    %c0_i32 = arith.constant 0 : i32
    %c0_i32_0 = arith.constant 0 : i32
    %c0_i32_1 = arith.constant 0 : i32
    return %c0_i32, %c0_i32_0 : i32, i32
  }
}

</mosaic_0001>

<bundles_post_ra>
// kernel: tpu_custom_call.1
= control target key start
LH: loop header
LB: loop body
LE: loop exit
PB: predicated region body
PF: predicated region fallthrough
CT: control target
= control target key end

     0   :  { %v191_v3 = vmov 0.0|0.0   ;;  %vm192_vm0 = vmmov 0   ;;  %v193_v6 = vmov 0.0   ;;  %s257_s0 = inlined_call_operand.vmem [shape: f32[8,64], index: 0, kind: input, shape index: {}]   ;;  %s258_s1 = inlined_call_operand.vmem [shape: f32[64,32], index: 1, kind: input, shape index: {}]   ;;  %s259_s2 = inlined_call_operand.vmem [shape: f32[1,32], index: 2, kind: input, shape index: {}]   ;;  %s260_s3 = inlined_call_operand.hbm [shape: f32[8,32], index: 3, kind: output, shape index: {}]  }
   0x1   :  { %v16_v0 = vld [vmem:[%s258_s1] sm:$0xff]  ;;  %v17_v1 = vld [vmem:[%s258_s1 + $0x8] sm:$0xff]  ;;  %v18_v2 = vld [vmem:[%s258_s1 + $0x10] sm:$0xff]  ;;  %151 = vmatprep.subr.bf16.mxu0 %v191_v3  ;;  %148 = vmatprep.mubr.msk.f32.mxu0 %vm192_vm0, %v193_v6 }
   0x2   :  { %v152_v4 = vpack.c.bf16 %v17_v1, %v16_v0  ;;  %v19_v5 = vld [vmem:[%s258_s1 + $0x18] sm:$0xff] }
   0x3   :  { %v155_v7 = vpack.c.bf16 %v19_v5, %v18_v2 }
   0x4   :  { %153 = vmatpush3.bf16.msra.mxu0 %v152_v4 }
   0x5   :  { %8 = vsyncpa [#allocation3], 0  ;;  %154 = vmatprep.subr.bf16.mxu0 %v191_v3  ;;  %v20_v8 = vld [vmem:[%s258_s1 + $0x20] sm:$0xff]  ;;  %v21_v9 = vld [vmem:[%s258_s1 + $0x28] sm:$0xff]  ;;  %vm31_vm1 = vcmask 523264   ;;  %s194_s5 = smov [#allocation2]  }
   0x6   :  { %v158_v10 = vpack.c.bf16 %v21_v9, %v20_v8  ;;  %v22_v11 = vld [vmem:[%s258_s1 + $0x30] sm:$0xff]  ;;  %v23_v12 = vld [vmem:[%s258_s1 + $0x38] sm:$0xff]  ;;  %v15_v14 = vld [vmem:[%s257_s0] sm:$0xff]  ;;  %s113_s6 = sshll.u32 %s194_s5, 4  ;;  %vm105_vm2 = vcmask 261120   ;;  %s114_s6 = int_to_ptr.vmem [resolvable:$true] %s113_s6 }
   0x7   :  { %v161_v13 = vpack.c.bf16 %v23_v12, %v22_v11  ;;  %v121_v15 = vld [vmem:[%s259_s2] ss:$0 sm:$0xff]  ;;  %s167_s1 = scalar_lea.vmem %s114_s6, 128  ;;  %p172_p1 = scmp.lt.s32.totalorder %s114_s6, %s114_s6 }
   0x8   :  { %156 = vmatpush3.bf16.msra.mxu0 %v155_v7  ;;  %p168_p0 = scmp.ne.s32.totalorder %s114_s6, %s167_s1  ;;  %p173_p2 = scmp.lt.s32.totalorder %s167_s1, %s167_s1 }
   0x9   :  { %157 = vmatprep.subr.bf16.mxu0 %v191_v3 }
   0xa   :  { %p174_p3 = por %p173_p2, %p172_p1 }
   0xc   :  { %159 = vmatpush3.bf16.msra.mxu0 %v158_v10  ;;  %p175_p4 = pnand %p174_p3, %p168_p0 }
   0xd   :  { %160 = vmatprep.subr.bf16.mxu0 %v191_v3 }
  0x10   :  { %162 = vmatpush3.bf16.msra.mxu0 %v161_v13 }
  0x13   :  { %149 = vmatmul.mubr.msk.f32.vlgmr.msra.gmra.mrb[0].mxu0 %vm31_vm1, %v15_v14 }
  0xe6   :  { %v101_v16 = vpop.f32.mrb[0].mxu0 }
  0xe7   :  { %v102_v17 = vadd.f32 %v121_v15, %v101_v16  ;;  %v150_v18 = vpop.f32.mrb[1].mxu0 }
  0xe9   :  { %106 = vst.msk [vmem:[#allocation2] sm:$0xff] %vm105_vm2, %v102_v17 }
  0xea   :  { %178 = shalt.err (!%p175_p4)
}
  0xeb   :  { %s179_s8 = scalar_lea.hbm %s260_s3, 128 }
  0xec   :  { %p180_p5 = scmp.ne.s32.totalorder %s260_s3, %s179_s8  ;;  %p183_p6 = scmp.lt.u32.totalorder %s179_s8, %s260_s3 }
  0xee   :  { %p185_p7 = pnand %p183_p6, %p180_p5 }
  0xf0   :  { %188 = shalt.err (!%p185_p7)
}
  0xf1   :  { %116 = dma.vmem_to_hbm [thread:$0]  %s114_s6, 128, %s260_s3, [#allocation3]  }
  0xf2   :  { %189 = dma.done.wait [#allocation3], 128  }
  0xf3   :  { %190 = vsyncadd [#allocation3], 4294967168 }
  0xf4   :  { %120 = vsyncpa [#allocation3], 1 }

</bundles_post_ra>
